<compile_context>
chip_gen: v6e
topology: v6e:2x2x1
jax: 0.10.0
libtpu: 0.0.40
codegen_flags: <defaults>
</compile_context>

<pallas_src>
import jax
import jax.numpy as jnp
from jax.experimental import pallas as pl
from jax.experimental.pallas import tpu as pltpu


def sac_q_kernel(x_ref, w1_ref, w2_ref, w3_ref, b_ref, q_ref):
    h1d = w1_ref.shape[0]
    h2d = w2_ref.shape[0]
    # Layer 1: (H1, in) @ (in, TILE_B) -> (H1, TILE_B), f32 accumulate (MXU).
    # K = in_dim (~20) is inherently low MXU utilization; padding K gains
    # nothing, so it is left as-is.
    h1 = jnp.dot(w1_ref[...], x_ref[...], preferred_element_type=jnp.float32)
    h1 = jnp.maximum(h1 + b_ref[0:h1d, :], 0.0)
    # Layer 2: (H2, H1) @ (H1, TILE_B) -> (H2, TILE_B), bf16 MXU, f32 acc.
    h2 = jnp.dot(w2_ref[...], h1.astype(jnp.bfloat16),
                 preferred_element_type=jnp.float32)
    h2 = jnp.maximum(h2 + b_ref[h1d:h1d + h2d, :], 0.0)
    # Output layer: (1, H2) @ (H2, TILE_B) -> (1, TILE_B).  Batch sits on the
    # lane axis, so the MXU emits the result lane-dense and the store /
    # HBM writeback are contiguous (no masked single-lane stores).
    q = jnp.dot(w3_ref[...], h2.astype(jnp.bfloat16),
                preferred_element_type=jnp.float32)
    q = q + b_ref[h1d + h2d:h1d + h2d + 1, :]
    q_ref[...] = q.astype(q_ref.dtype)


def _round_up(n, m):
    return ((n + m - 1) // m) * m


def sac_q_forward(x, params, *, tile_b=2048):
    """Q(x) for x of shape (batch, num_inputs + num_actions) -> (batch, 1).

    params are in torch Linear layout: w (out_features, in_features), b (out,).
    """
    w1, b1, w2, b2, w3, b3 = params
    batch, in_dim = x.shape
    h1d, h2d = w1.shape[0], w2.shape[0]
    assert w1.shape == (h1d, in_dim)
    assert w2.shape == (h2d, h1d)
    assert w3.shape == (1, h2d)

    # ---- Tile / grid sizing -------------------------------------------------
    # tile_b multiple of 128 (lane width); cap it so the grid has >= 4 steps
    # (2 per v7x TensorCore) whenever the batch is large enough, and never pad
    # a small batch beyond round_up(batch, 128).
    tile_b = max(128, _round_up(tile_b, 128))
    n128 = _round_up(batch, 128) // 128
    target_steps = min(4, max(1, n128))
    tile_b = min(tile_b, max(128, (n128 // target_steps) * 128))
    padded = _round_up(batch, tile_b)
    grid = (padded // tile_b,)

    # ---- One-time casts / layout prep (wrapper side, not per grid step) -----
    x_t = x.T.astype(jnp.bfloat16)                       # (in_dim, batch)
    if padded != batch:
        x_t = jnp.pad(x_t, ((0, 0), (0, padded - batch)))
    w1_bf = w1.astype(jnp.bfloat16)                      # (H1, in_dim)
    w2_bf = w2.astype(jnp.bfloat16)                      # (H2, H1)
    w3_bf = w3.astype(jnp.bfloat16)                      # (1, H2)
    # Packed biases: rows [0:H1) = b1, [H1:H1+H2) = b2, last row = b3.
    bias_pack = jnp.concatenate(
        [b1.reshape(h1d), b2.reshape(h2d), b3.reshape(1)]
    ).astype(jnp.float32).reshape(h1d + h2d + 1, 1)

    # ---- Cost / VMEM accounting ---------------------------------------------
    flops = 2 * padded * (in_dim * h1d + h1d * h2d + h2d)
    bytes_accessed = (
        padded * in_dim * 2                               # x (bf16)
        + (h1d * in_dim + h1d * h2d + h2d) * 2            # weights (bf16)
        + (h1d + h2d + 1) * 4                             # packed biases (f32)
        + padded * 4                                      # q output (f32)
    )
    # Double-buffered operands + resident weights + f32 intermediates; the
    # (H1+H2+1, 1) bias pack is counted at its padded (8,128)-tile size.
    footprint = (
        2 * (in_dim * tile_b * 2)                         # x tile, dbuf, bf16
        + 2 * (h1d * in_dim + h1d * h2d + h2d) * 2        # weights, dbuf, bf16
        + 2 * (_round_up(h1d + h2d + 1, 8) * 128 * 4)     # bias pack, padded
        + 2 * (tile_b * 4)                                # output tile, dbuf
        + (h1d + h2d) * tile_b * 4                        # h1 / h2 f32
    )
    vmem_limit = min(128 * 1024 * 1024, max(16 * 1024 * 1024, 2 * footprint))

    q_slab = pl.pallas_call(
        sac_q_kernel,
        out_shape=jax.ShapeDtypeStruct((1, padded), jnp.float32),
        grid_spec=pltpu.PrefetchScalarGridSpec(
            num_scalar_prefetch=0,
            grid=grid,
            in_specs=[
                pl.BlockSpec((in_dim, tile_b), lambda i: (0, i)),      # x.T tile
                pl.BlockSpec((h1d, in_dim), lambda i: (0, 0)),         # w1 resident
                pl.BlockSpec((h2d, h1d), lambda i: (0, 0)),            # w2 resident
                pl.BlockSpec((1, h2d), lambda i: (0, 0)),              # w3 resident
                pl.BlockSpec((h1d + h2d + 1, 1), lambda i: (0, 0)),    # packed biases
            ],
            out_specs=pl.BlockSpec((1, tile_b), lambda i: (0, i)),     # lane-dense q
        ),
        compiler_params=pltpu.CompilerParams(
            dimension_semantics=("parallel",),
            vmem_limit_bytes=vmem_limit,
        ),
        cost_estimate=pl.CostEstimate(
            flops=flops, transcendentals=0, bytes_accessed=bytes_accessed),
    )(x_t, w1_bf, w2_bf, w3_bf, bias_pack)

    # Padded lanes hold garbage (ReLU of biases) -- slice them off here.
    return q_slab[0, :batch].reshape(batch, 1)


def xavier_uniform(key, out_features, in_features, dtype=jnp.float32):
    limit = jnp.sqrt(6.0 / (in_features + out_features)).astype(dtype)
    return jax.random.uniform(key, (out_features, in_features), dtype, -limit, limit)


def init_params(key, in_dim, hidden_units=(256, 256)):
    h1, h2 = hidden_units
    k1, k2, k3 = jax.random.split(key, 3)
    # torch Linear layout: weight (out_features, in_features), bias (out_features,)
    w1 = xavier_uniform(k1, h1, in_dim)
    b1 = jnp.zeros((h1,), jnp.float32)
    w2 = xavier_uniform(k2, h2, h1)
    b2 = jnp.zeros((h2,), jnp.float32)
    w3 = xavier_uniform(k3, 1, h2)
    b3 = jnp.zeros((1,), jnp.float32)
    return (w1, b1, w2, b2, w3, b3)


def reference_forward(x, params):
    # Full-f32 reference (matches the torch module's math).
    w1, b1, w2, b2, w3, b3 = params
    h1 = jnp.maximum(x @ w1.T + b1, 0.0)
    h2 = jnp.maximum(h1 @ w2.T + b2, 0.0)
    return h2 @ w3.T + b3


if __name__ == "__main__":
    num_inputs = 16
    num_actions = 4
    batch = 300                      # not a multiple of 128 -> exercises padding + multi-step grid
    in_dim = num_inputs + num_actions

    key = jax.random.PRNGKey(0)
    kx, kp = jax.random.split(key)
    # x is the concatenation of state and action features: (batch, in_dim)
    x = jax.random.normal(kx, (batch, in_dim), jnp.float32)
    params = init_params(kp, in_dim, hidden_units=(256, 256))

    q = sac_q_forward(x, params)     # batch=300 -> tile_b=128, padded=384, 3 grid steps
    q = jax.block_until_ready(q)

    q_ref = reference_forward(x, params)
    assert q.shape == (batch, 1)
    # bf16 inputs/weights with f32 accumulation: allow ~1e-2-level deviation.
    assert jnp.allclose(q, q_ref, atol=5e-2, rtol=5e-2), "mismatch vs reference"

    print("KERNEL_OK")
</pallas_src>

<mosaic_0001>
module attributes {stable_mosaic.version = 11 : i64} {
  func.func @sac_q_kernel(%arg0: i32, %arg1: memref<20x128xbf16, #tpu.memory_space<vmem>>, %arg2: memref<256x20xbf16, #tpu.memory_space<vmem>>, %arg3: memref<256x256xbf16, #tpu.memory_space<vmem>>, %arg4: memref<1x256xbf16, #tpu.memory_space<vmem>>, %arg5: memref<513x1xf32, #tpu.memory_space<vmem>>, %arg6: memref<1x128xf32, #tpu.memory_space<vmem>>) attributes {dimension_semantics = [#tpu.dimension_semantics<parallel>], iteration_bounds = array<i64: 3>, scalar_prefetch = 0 : i64, scratch_operands = 0 : i64, tpu.core_type = #tpu.core_type<tc>, window_params = [{transform_indices = @transform_0, window_bounds = array<i64: 20, 128>}, {pipeline_mode = #tpu.pipeline_mode<synchronous>, transform_indices = @transform_1, window_bounds = array<i64: 256, 20>}, {pipeline_mode = #tpu.pipeline_mode<synchronous>, transform_indices = @transform_2, window_bounds = array<i64: 256, 256>}, {pipeline_mode = #tpu.pipeline_mode<synchronous>, transform_indices = @transform_3, window_bounds = array<i64: 1, 256>}, {pipeline_mode = #tpu.pipeline_mode<synchronous>, transform_indices = @transform_4, window_bounds = array<i64: 513, 1>}, {transform_indices = @transform_5, window_bounds = array<i64: 1, 128>}]} {
    %c0 = arith.constant 0 : index
    %c0_0 = arith.constant 0 : index
    %0 = vector.load %arg2[%c0, %c0_0] : memref<256x20xbf16, #tpu.memory_space<vmem>>, vector<256x20xbf16>
    %c0_1 = arith.constant 0 : index
    %c0_2 = arith.constant 0 : index
    %1 = vector.load %arg1[%c0_1, %c0_2] : memref<20x128xbf16, #tpu.memory_space<vmem>>, vector<20x128xbf16>
    %cst = arith.constant dense<0.000000e+00> : vector<256x128xf32>
    %2 = tpu.matmul %0, %1, %cst {dimension_numbers = #tpu.dot_dimension_numbers<[1], [0], [0], [1], [0, 0, 1, 1], [], []>} : vector<256x20xbf16>, vector<20x128xbf16>, vector<256x128xf32> -> vector<256x128xf32>
    %c0_3 = arith.constant 0 : index
    %c0_4 = arith.constant 0 : index
    %3 = vector.load %arg5[%c0_3, %c0_4] : memref<513x1xf32, #tpu.memory_space<vmem>>, vector<256x1xf32>
    %4 = vector.broadcast %3 : vector<256x1xf32> to vector<256x128xf32>
    %5 = arith.addf %2, %4 : vector<256x128xf32>
    %cst_5 = arith.constant 0.000000e+00 : f32
    %6 = vector.broadcast %cst_5 : f32 to vector<256x128xf32>
    %7 = arith.maximumf %5, %6 : vector<256x128xf32>
    %c0_6 = arith.constant 0 : index
    %c0_7 = arith.constant 0 : index
    %8 = vector.load %arg3[%c0_6, %c0_7] : memref<256x256xbf16, #tpu.memory_space<vmem>>, vector<256x256xbf16>
    %9 = arith.truncf %7 : vector<256x128xf32> to vector<256x128xbf16>
    %cst_8 = arith.constant dense<0.000000e+00> : vector<256x128xf32>
    %10 = tpu.matmul %8, %9, %cst_8 {dimension_numbers = #tpu.dot_dimension_numbers<[1], [0], [0], [1], [0, 0, 1, 1], [], []>} : vector<256x256xbf16>, vector<256x128xbf16>, vector<256x128xf32> -> vector<256x128xf32>
    %c256 = arith.constant 256 : index
    %c0_9 = arith.constant 0 : index
    %11 = vector.load %arg5[%c256, %c0_9] : memref<513x1xf32, #tpu.memory_space<vmem>>, vector<256x1xf32>
    %12 = vector.broadcast %11 : vector<256x1xf32> to vector<256x128xf32>
    %13 = arith.addf %10, %12 : vector<256x128xf32>
    %cst_10 = arith.constant 0.000000e+00 : f32
    %14 = vector.broadcast %cst_10 : f32 to vector<256x128xf32>
    %15 = arith.maximumf %13, %14 : vector<256x128xf32>
    %c0_11 = arith.constant 0 : index
    %c0_12 = arith.constant 0 : index
    %16 = vector.load %arg4[%c0_11, %c0_12] : memref<1x256xbf16, #tpu.memory_space<vmem>>, vector<1x256xbf16>
    %17 = arith.truncf %15 : vector<256x128xf32> to vector<256x128xbf16>
    %cst_13 = arith.constant dense<0.000000e+00> : vector<1x128xf32>
    %18 = tpu.matmul %16, %17, %cst_13 {dimension_numbers = #tpu.dot_dimension_numbers<[1], [0], [0], [1], [0, 0, 1, 1], [], []>} : vector<1x256xbf16>, vector<256x128xbf16>, vector<1x128xf32> -> vector<1x128xf32>
    %c512 = arith.constant 512 : index
    %c0_14 = arith.constant 0 : index
    %19 = vector.load %arg5[%c512, %c0_14] : memref<513x1xf32, #tpu.memory_space<vmem>>, vector<1x1xf32>
    %20 = vector.broadcast %19 : vector<1x1xf32> to vector<1x128xf32>
    %21 = arith.addf %18, %20 : vector<1x128xf32>
    %c0_15 = arith.constant 0 : index
    %c0_16 = arith.constant 0 : index
    %22 = vector.load %arg6[%c0_15, %c0_16] : memref<1x128xf32, #tpu.memory_space<vmem>>, vector<1x128xf32>
    tpu.vector_store %arg6[%c0_15, %c0_16], %21 {strides = array<i32>} : memref<1x128xf32, #tpu.memory_space<vmem>>, vector<1x128xf32>,
    return
  }
  func.func @transform_0(%arg0: i32) -> (i32, i32) {
    %c0_i32 = arith.constant 0 : i32
    %c0_i32_0 = arith.constant 0 : i32
    return %c0_i32, %arg0 : i32, i32
  }
  func.func @transform_1(%arg0: i32) -> (i32, i32) {
    %c0_i32 = arith.constant 0 : i32
    %c0_i32_0 = arith.constant 0 : i32
    %c0_i32_1 = arith.constant 0 : i32
    return %c0_i32, %c0_i32_0 : i32, i32
  }
  func.func @transform_2(%arg0: i32) -> (i32, i32) {
    %c0_i32 = arith.constant 0 : i32
    %c0_i32_0 = arith.constant 0 : i32
    %c0_i32_1 = arith.constant 0 : i32
    return %c0_i32, %c0_i32_0 : i32, i32
  }
  func.func @transform_3(%arg0: i32) -> (i32, i32) {
    %c0_i32 = arith.constant 0 : i32
    %c0_i32_0 = arith.constant 0 : i32
    %c0_i32_1 = arith.constant 0 : i32
    return %c0_i32, %c0_i32_0 : i32, i32
  }
  func.func @transform_4(%arg0: i32) -> (i32, i32) {
    %c0_i32 = arith.constant 0 : i32
    %c0_i32_0 = arith.constant 0 : i32
    %c0_i32_1 = arith.constant 0 : i32
    return %c0_i32, %c0_i32_0 : i32, i32
  }
  func.func @transform_5(%arg0: i32) -> (i32, i32) {
    %c0_i32 = arith.constant 0 : i32
    %c0_i32_0 = arith.constant 0 : i32
    return %c0_i32, %arg0 : i32, i32
  }
}

</mosaic_0001>

<bundles_post_ra>
// kernel: tpu_custom_call.1
= control target key start
LH: loop header
LB: loop body
LE: loop exit
PB: predicated region body
PF: predicated region fallthrough
CT: control target
= control target key end

     0   :  { %10 = vsyncpa [#allocation4], 0  ;;  %s2783_s0 = inlined_call_operand.vmem [shape: bf16[20,384], index: 0, kind: input, shape index: {}]   ;;  %s2784_s1 = inlined_call_operand.vmem [shape: bf16[256,20], index: 1, kind: input, shape index: {}]   ;;  %s2785_s2 = inlined_call_operand.vmem [shape: bf16[256,256], index: 2, kind: input, shape index: {}]   ;;  %s2786_s3 = inlined_call_operand.vmem [shape: bf16[1,256], index: 3, kind: input, shape index: {}]   ;;  %s2787_s4 = inlined_call_operand.vmem [shape: f32[513,1], index: 4, kind: input, shape index: {}]   ;;  %s2788_s5 = inlined_call_operand.hbm [shape: f32[1,384], index: 5, kind: output, shape index: {}]  }
   0x1   :  { %12 = vsyncpa [#allocation4 + $0x1], 0  ;;  %s2078_s18 = smov 0   ;;  %s2080_s19 = smov 0  }
   0x2   :  { %s2082_s20 = smov 0   ;;  %s2084_s21 = smov 0  }
   0x3 LB: > { %s1591_s22 = sadd.s32 4294967295, %s2043_s21   ;;  %s1592_s23 = sadd.s32 4294967294, %s2043_s21   ;;  %s2043_s21 = sphi %s2084_s21, %s2833_s21   ;;  %s2039_s20 = sphi %s2082_s20, %s2832_s20   ;;  %s2035_s19 = sphi %s2080_s19, %s2831_s19   ;;  %s2031_s18 = sphi %s2078_s18, %s2830_s18  }
   0x4   : > { %s2101_s24 = sadd.s32 1, %s2043_s21   ;;  %s25_s25 = sadd.s32 1, %s2039_s20 }
   0x5   : > { %s22_s26 = ssub.s32 %s2043_s21, %s2101_s24  ;;  %p32_p0 = scmp.ne.s32.totalorder %s2039_s20, %s2035_s19 }
   0x6   : > { %p23_p1 = scmp.eq.s32.totalorder %s22_s26, 0  ;;  %p33_p2 = scmp.eq.s32.totalorder %s2043_s21, 0 }
   0x7   : > { %p146_p3 = scmp.eq.s32.totalorder %s1591_s22, 2  ;;  %p151_p4 = scmp.ne.s32.totalorder %s2035_s19, %s2031_s18 }
   0x8   : > { %s2114_s27 = scalar_select %p23_p1, %s2039_s20, %s25_s25  }
   0x9   : > { %p34_p5 = por %p33_p2, %p32_p0  ;;  %p2116_p6 = por %p146_p3, %p32_p0 }
   0xa   : > { %p152_p7 = scmp.eq.s32.totalorder %s1592_s23, 2  ;;  %p1594_p9 = scmp.ge.s32.totalorder %s2043_s21, 3 }
   0xc   : > { %p2120_p8 = por %p152_p7, %p151_p4  ;;  %180 = sbr.rel (%p1594_p9) target bundleno = 24 (0x18), region = 32 }
  0x11   : > { %183 = sbr.rel (!%p34_p5) target bundleno = 24 (0x18), region = 36  ;;  %s185_s30 = sand.u32 (%p34_p5), 1, %s2039_s20  }
  0x12   : > { %s1595_s6 = sshll.u32 (%p34_p5), %s2043_s21, 2  ;;  %s1872_s7 = smul.u32 (%p34_p5), 12, %s185_s30 }
  0x13   : > { %s189_s10 = scalar_lea.vmem (%p34_p5), %s2783_s0, %s1595_s6 }
  0x14   : > { %v206_v0 = vld [vmem:[%s189_s10] sm:$0xf] (%p34_p5)  ;;  %v208_v1 = vld [vmem:[%s189_s10 + $0xc] sm:$0xf] (%p34_p5)  ;;  %v210_v2 = vld [vmem:[%s189_s10 + $0x18] sm:$0xf] (%p34_p5) }
  0x15   : > { %s187_s11 = scalar_lea.vmem (%p34_p5), [#allocation2], %s1872_s7 }
  0x16   : > { %207 = vst [vmem:[%s187_s11] sm:$0xf] %v206_v0  ;;  %209 = vst [vmem:[%s187_s11 + $0x4] sm:$0xf] %v208_v1 }
  0x17   : > { %211 = vst [vmem:[%s187_s11 + $0x8] sm:$0xf] %v210_v2 }
  0x18 PF: > { %p1596_p10 = scmp.ge.s32.totalorder %s2043_s21, 1  ;;  %p240_p11 = scmp.lt.s32.totalorder %s2043_s21, 4 }
  0x1a   : > { %p241_p12 = pnand %p1596_p10, %p240_p11 }
  0x1c   : > { %244 = sbr.rel (%p241_p12) target bundleno = 870 (0x366), region = 77 }
  0x21   : > { %v339_v3 = vld [vmem:[%s2787_s4 + $0xf0] sm:$0xff]  ;;  %s2139_s16 = sand.u32 1, %s2035_s19   ;;  %v2045_v5 = vmov 0   ;;  %v340_v6 = vld [vmem:[%s2787_s4 + $0xf8] sm:$0xff]  ;;  %vm639_vm0 = vcmask 1041408   ;;  %vm590_vm1 = vcmask 162816  }
  0x22   : > { %v323_v4 = vld [vmem:[%s2787_s4 + $0x70] sm:$0xff]  ;;  %1916 = vset.pattern.permute.xlu1 %v2045_v5  ;;  %1915 = vset.pattern.permute.xlu0 %v2045_v5  ;;  %s1873_s17 = smul.u32 12, %s2139_s16  ;;  %v324_v7 = vld [vmem:[%s2787_s4 + $0x78] sm:$0xff]  ;;  %v1919_v8 = vld [vmem:[%s2784_s1] sm:$0xff]   ;;  %s1664_s23 = sshll.u32 %s1591_s22, 4 }
  0x23   : > { %493 = vperm.xlu0 %1915, %v339_v3   ;;  %413 = vperm.xlu1 %1916, %v323_v4   ;;  %v337_v12 = vld [vmem:[%s2787_s4 + $0xe0] sm:$0xff]  ;;  %v338_v13 = vld [vmem:[%s2787_s4 + $0xe8] sm:$0xff]  ;;  %v1921_v17 = vld [vmem:[%s2784_s1 + $0x10] sm:$0xff]   ;;  %s272_s25 = scalar_lea.vmem [#allocation3], %s2139_s16  ;;  %s2747_s7 = scalar_lea.hbm %s2788_s5, %s1664_s23 }
  0x24   : > { %s249_s8 = scalar_lea.vmem [#allocation2], %s1873_s17  ;;  %1823 = vmatprep.mubr.msk.bf16.mxu0 %vm590_vm1, %v1919_v8  ;;  %v322_v14 = vld [vmem:[%s2787_s4 + $0x68] sm:$0xff]  ;;  %v321_v15 = vld [vmem:[%s2787_s4 + $0x60] sm:$0xff]  ;;  %v336_v18 = vld [vmem:[%s2787_s4 + $0xd8] sm:$0xff]  ;;  %s1531_s26 = sshll.u32 %s272_s25, 4  ;;  %s1532_s26 = int_to_ptr.vmem [resolvable:$true] %s1531_s26 }
  0x25   : > { %v1917_v9 = vld [vmem:[%s249_s8 + $0x8] ss:$0 sps:$4 sm:$0x33]   ;;  %v1918_v10 = vld [vmem:[%s249_s8] sm:$0xff]   ;;  %v320_v20 = vld [vmem:[%s2787_s4 + $0x58] sm:$0xff]  ;;  %s1519_s8 = scalar_lea.sflag [#allocation4], %s2139_s16 }
  0x26   : > { %v641_v11 = vsel %vm639_vm0, %v1917_v9, 0  ;;  %1871 = vmatprep.subr.msk.bf16.mxu0 %vm639_vm0, %v1917_v9  ;;  %v1920_v16 = vld [vmem:[%s2784_s1 + $0x8] sm:$0xff]   ;;  %v335_v19 = vld [vmem:[%s2787_s4 + $0xd0] sm:$0xff]  ;;  %v1922_v22 = vld [vmem:[%s2784_s1 + $0x18] sm:$0xff]   ;;  %s1983_s9 = scalar_lea.vmem %s1532_s26, 16  ;;  %s2047_s22 = smov [#allocation3]  }
  0x27   : > { %498 = vperm.xlu0 %1915, %v340_v6   ;;  %418 = vperm.xlu1 %1916, %v324_v7   ;;  %v319_v21 = vld [vmem:[%s2787_s4 + $0x50] sm:$0xff]  ;;  %v1923_v23 = vld [vmem:[%s2784_s1 + $0x20] sm:$0xff]   ;;  %v334_v24 = vld [vmem:[%s2787_s4 + $0xc8] sm:$0xff]  ;;  %p1984_p13 = scmp.ne.s32.totalorder %s1532_s26, %s1983_s9  ;;  %s1987_s10 = sshll.u32 %s2047_s22, 4  ;;  %s1988_s10 = int_to_ptr.vmem [resolvable:$false] %s1987_s10 }
  0x28   : > { %1820 = vmatpush3.bf16.msra.mxu0 %v641_v11  ;;  %v333_v25 = vld [vmem:[%s2787_s4 + $0xc0] sm:$0xff]  ;;  %v318_v26 = vld [vmem:[%s2787_s4 + $0x48] sm:$0xff]  ;;  %v1925_v29 = vld [vmem:[%s2784_s1 + $0x30] sm:$0xff]   ;;  %s1989_s11 = scalar_lea.vmem %s1988_s10, 32  ;;  %p1990_p2 = scmp.lt.s32.totalorder %s1532_s26, %s1988_s10 }
  0x29   : > { %1821 = vmatprep.subr.bf16.mxu0 %v1918_v10  ;;  %v317_v27 = vld [vmem:[%s2787_s4 + $0x40] sm:$0xff]  ;;  %v1924_v28 = vld [vmem:[%s2784_s1 + $0x28] sm:$0xff]   ;;  %v332_v30 = vld [vmem:[%s2787_s4 + $0xb8] sm:$0xff]  ;;  %p1985_p0 = pnand %p1984_p13, %p2116_p6  ;;  %p1991_p3 = scmp.lt.s32.totalorder %s1989_s11, %s1983_s9 }
  0x2a   : > { %v331_v31 = vld [vmem:[%s2787_s4 + $0xb0] sm:$0xff]  ;;  %v316_v32 = vld [vmem:[%s2787_s4 + $0x38] sm:$0xff]  ;;  %v1927_v35 = vld [vmem:[%s2784_s1 + $0x40] sm:$0xff]  }
  0x2b   : > { %483 = vperm.xlu0 %1915, %v337_v12   ;;  %488 = vperm.xlu1 %1916, %v338_v13   ;;  %v315_v33 = vld [vmem:[%s2787_s4 + $0x30] sm:$0xff]  ;;  %v1926_v34 = vld [vmem:[%s2784_s1 + $0x38] sm:$0xff]   ;;  %v330_v36 = vld [vmem:[%s2787_s4 + $0xa8] sm:$0xff]  ;;  %p1986_p1 = pneg %p1985_p0  ;;  %p1992_p4 = por %p1991_p3, %p1990_p2 }
  0x2c   : > { %1822 = vmatpush3.bf16.msra.mxu0 %v1918_v10  ;;  %v329_v37 = vld [vmem:[%s2787_s4 + $0xa0] sm:$0xff]  ;;  %v314_v38 = vld [vmem:[%s2787_s4 + $0x28] sm:$0xff]  ;;  %v1929_v41 = vld [vmem:[%s2784_s1 + $0x50] sm:$0xff]  }
  0x2d   : > { %v313_v39 = vld [vmem:[%s2787_s4 + $0x20] sm:$0xff]  ;;  %v1928_v40 = vld [vmem:[%s2784_s1 + $0x48] sm:$0xff]   ;;  %v328_v42 = vld [vmem:[%s2787_s4 + $0x98] sm:$0xff]  ;;  %p1993_p5 = pnand %p1992_p4, %p1986_p1 }
  0x2e   : > { %v327_v43 = vld [vmem:[%s2787_s4 + $0x90] sm:$0xff]  ;;  %v312_v44 = vld [vmem:[%s2787_s4 + $0x18] sm:$0xff]  ;;  %v1931_v47 = vld [vmem:[%s2784_s1 + $0x60] sm:$0xff]  }
  0x2f   : > { %408 = vperm.xlu1 %1916, %v322_v14   ;;  %403 = vperm.xlu0 %1915, %v321_v15   ;;  %v311_v45 = vld [vmem:[%s2787_s4 + $0x10] sm:$0xff]  ;;  %v1930_v46 = vld [vmem:[%s2784_s1 + $0x58] sm:$0xff]   ;;  %v326_v48 = vld [vmem:[%s2787_s4 + $0x88] sm:$0xff] }
  0x30   : > { %1824 = vmatmul.mubr.msk.bf16.vlgmr.msra.gmra.mxu0 %vm590_vm1, %v1920_v16  ;;  %v325_v49 = vld [vmem:[%s2787_s4 + $0x80] sm:$0xff]  ;;  %v310_v50 = vld [vmem:[%s2787_s4 + $0x8] sm:$0xff]  ;;  %v1933_v53 = vld [vmem:[%s2784_s1 + $0x70] sm:$0xff]  }
  0x31   : > { %1827 = vmatprep.mubr.msk.bf16.mxu0 %vm590_vm1, %v1921_v17  ;;  %v309_v51 = vld [vmem:[%s2787_s4] sm:$0xff]  ;;  %v1932_v52 = vld [vmem:[%s2784_s1 + $0x68] sm:$0xff]   ;;  %v915_v54 = vld [vmem:[%s2787_s4 + $0x1f8] sm:$0xff] }
  0x32   : > { %v914_v55 = vld [vmem:[%s2787_s4 + $0x1f0] sm:$0xff]  ;;  %v899_v56 = vld [vmem:[%s2787_s4 + $0x178] sm:$0xff]  ;;  %v913_v59 = vld [vmem:[%s2787_s4 + $0x1e8] sm:$0xff] }
  0x33   : > { %478 = vperm.xlu1 %1916, %v336_v18   ;;  %473 = vperm.xlu0 %1915, %v335_v19   ;;  %v898_v57 = vld [vmem:[%s2787_s4 + $0x170] sm:$0xff]  ;;  %v1934_v58 = vld [vmem:[%s2784_s1 + $0x78] sm:$0xff]   ;;  %v912_v60 = vld [vmem:[%s2787_s4 + $0x1e0] sm:$0xff] }
  0x34   : > { %v897_v61 = vld [vmem:[%s2787_s4 + $0x168] sm:$0xff]  ;;  %v896_v62 = vld [vmem:[%s2787_s4 + $0x160] sm:$0xff]  ;;  %v911_v63 = vld [vmem:[%s2787_s4 + $0x1d8] sm:$0xff] }
  0x35   : > { %v910_v0 = vld [vmem:[%s2787_s4 + $0x1d0] sm:$0xff]  ;;  %v895_v1 = vld [vmem:[%s2787_s4 + $0x158] sm:$0xff]  ;;  %v909_v3 = vld [vmem:[%s2787_s4 + $0x1c8] sm:$0xff] }
  0x36   : > { %v894_v2 = vld [vmem:[%s2787_s4 + $0x150] sm:$0xff]  ;;  %v908_v4 = vld [vmem:[%s2787_s4 + $0x1c0] sm:$0xff]  ;;  %v893_v5 = vld [vmem:[%s2787_s4 + $0x148] sm:$0xff] }
  0x37   : > { %398 = vperm.xlu1 %1916, %v320_v20   ;;  %393 = vperm.xlu0 %1915, %v319_v21   ;;  %v892_v6 = vld [vmem:[%s2787_s4 + $0x140] sm:$0xff]  ;;  %v907_v7 = vld [vmem:[%s2787_s4 + $0x1b8] sm:$0xff]  ;;  %v906_v8 = vld [vmem:[%s2787_s4 + $0x1b0] sm:$0xff] }
  0x38   : > { %1828 = vmatmul.mubr.msk.bf16.gmra.mxu0 %vm590_vm1, %v1922_v22  ;;  %v891_v9 = vld [vmem:[%s2787_s4 + $0x138] sm:$0xff]  ;;  %v890_v10 = vld [vmem:[%s2787_s4 + $0x130] sm:$0xff]  ;;  %v905_v11 = vld [vmem:[%s2787_s4 + $0x1a8] sm:$0xff] }
  0x39   : > { %1831 = vmatprep.mubr.msk.bf16.mxu0 %vm590_vm1, %v1923_v23  ;;  %v904_v12 = vld [vmem:[%s2787_s4 + $0x1a0] sm:$0xff]  ;;  %v889_v13 = vld [vmem:[%s2787_s4 + $0x128] sm:$0xff]  ;;  %v903_v15 = vld [vmem:[%s2787_s4 + $0x198] sm:$0xff] }
  0x3a   : > { %v888_v14 = vld [vmem:[%s2787_s4 + $0x120] sm:$0xff]  ;;  %v902_v16 = vld [vmem:[%s2787_s4 + $0x190] sm:$0xff]  ;;  %v887_v17 = vld [vmem:[%s2787_s4 + $0x118] sm:$0xff] }
  0x3b   : > { %468 = vperm.xlu1 %1916, %v334_v24   ;;  %463 = vperm.xlu0 %1915, %v333_v25   ;;  %v886_v18 = vld [vmem:[%s2787_s4 + $0x110] sm:$0xff]  ;;  %v901_v19 = vld [vmem:[%s2787_s4 + $0x188] sm:$0xff]  ;;  %v900_v20 = vld [vmem:[%s2787_s4 + $0x180] sm:$0xff] }
  0x3c   : > { %v885_v21 = vld [vmem:[%s2787_s4 + $0x108] sm:$0xff]  ;;  %v884_v22 = vld [vmem:[%s2787_s4 + $0x100] sm:$0xff] }
  0x3d   : > { %v1446_v25 = vld [vmem:[%s2787_s4 + $0x200] sm:$0x1] }
  0x3f   : > { %388 = vperm.xlu1 %1916, %v318_v26   ;;  %383 = vperm.xlu0 %1915, %v317_v27  }
  0x40   : > { %1832 = vmatmul.mubr.msk.bf16.gmra.mxu0 %vm590_vm1, %v1924_v28 }
  0x41   : > { %1835 = vmatprep.mubr.msk.bf16.mxu0 %vm590_vm1, %v1925_v29 }
  0x43   : > { %458 = vperm.xlu1 %1916, %v332_v30   ;;  %453 = vperm.xlu0 %1915, %v331_v31  }
  0x47   : > { %378 = vperm.xlu1 %1916, %v316_v32   ;;  %373 = vperm.xlu0 %1915, %v315_v33  }
  0x48   : > { %1836 = vmatmul.mubr.msk.bf16.gmra.mxu0 %vm590_vm1, %v1926_v34 }
  0x49   : > { %1839 = vmatprep.mubr.msk.bf16.mxu0 %vm590_vm1, %v1927_v35 }
  0x4b   : > { %448 = vperm.xlu1 %1916, %v330_v36   ;;  %443 = vperm.xlu0 %1915, %v329_v37  }
  0x4f   : > { %368 = vperm.xlu1 %1916, %v314_v38   ;;  %363 = vperm.xlu0 %1915, %v313_v39  }
  0x50   : > { %1840 = vmatmul.mubr.msk.bf16.gmra.mxu0 %vm590_vm1, %v1928_v40 }
  0x51   : > { %1843 = vmatprep.mubr.msk.bf16.mxu0 %vm590_vm1, %v1929_v41 }
  0x53   : > { %438 = vperm.xlu1 %1916, %v328_v42   ;;  %433 = vperm.xlu0 %1915, %v327_v43   ;;  %v1937_v43 = vld [vmem:[%s2785_s2 + $0x4] ss:$8 sps:$4 sm:$0xff]  }
  0x57   : > { %358 = vperm.xlu1 %1916, %v312_v44   ;;  %353 = vperm.xlu0 %1915, %v311_v45   ;;  %v1940_v44 = vld [vmem:[%s2785_s2 + $0x54] ss:$8 sps:$4 sm:$0xff]  }
  0x58   : > { %1844 = vmatmul.mubr.msk.bf16.gmra.mxu0 %vm590_vm1, %v1930_v46  ;;  %1308 = vmatprep.mubr.bf16.mxu1 %v1940_v44 }
  0x59   : > { %1847 = vmatprep.mubr.msk.bf16.mxu0 %vm590_vm1, %v1931_v47 }
  0x5b   : > { %428 = vperm.xlu1 %1916, %v326_v48   ;;  %423 = vperm.xlu0 %1915, %v325_v49  }
  0x5f   : > { %348 = vperm.xlu1 %1916, %v310_v50   ;;  %343 = vperm.xlu0 %1915, %v309_v51  }
  0x60   : > { %1848 = vmatmul.mubr.msk.bf16.gmra.mxu0 %vm590_vm1, %v1932_v52 }
  0x61   : > { %1851 = vmatprep.mubr.msk.bf16.mxu0 %vm590_vm1, %v1933_v53 }
  0x63   : > { %1073 = vperm.xlu1 %1916, %v915_v54   ;;  %1068 = vperm.xlu0 %1915, %v914_v55  }
  0x67   : > { %993 = vperm.xlu1 %1916, %v899_v56   ;;  %988 = vperm.xlu0 %1915, %v898_v57  }
  0x68   : > { %1852 = vmatmul.mubr.msk.bf16.gmra.mxu0 %vm590_vm1, %v1934_v58 }
  0x69   : > { %1268 = vmatprep.mubr.bf16.mxu0 %v1937_v43 }
  0x6b   : > { %1063 = vperm.xlu1 %1916, %v913_v59   ;;  %1058 = vperm.xlu0 %1915, %v912_v60  }
  0x6f   : > { %983 = vperm.xlu1 %1916, %v897_v61   ;;  %978 = vperm.xlu0 %1915, %v896_v62  }
  0x73   : > { %1053 = vperm.xlu1 %1916, %v911_v63   ;;  %1048 = vperm.xlu0 %1915, %v910_v0  }
  0x77   : > { %973 = vperm.xlu1 %1916, %v895_v1   ;;  %968 = vperm.xlu0 %1915, %v894_v2  }
  0x7b   : > { %1043 = vperm.xlu1 %1916, %v909_v3   ;;  %1038 = vperm.xlu0 %1915, %v908_v4  }
  0x7f   : > { %963 = vperm.xlu1 %1916, %v893_v5   ;;  %958 = vperm.xlu0 %1915, %v892_v6  }
  0x83   : > { %1033 = vperm.xlu1 %1916, %v907_v7   ;;  %1028 = vperm.xlu0 %1915, %v906_v8  }
  0x87   : > { %953 = vperm.xlu1 %1916, %v891_v9   ;;  %948 = vperm.xlu0 %1915, %v890_v10  }
  0x8b   : > { %1023 = vperm.xlu1 %1916, %v905_v11   ;;  %1018 = vperm.xlu0 %1915, %v904_v12  }
  0x8f   : > { %943 = vperm.xlu1 %1916, %v889_v13   ;;  %938 = vperm.xlu0 %1915, %v888_v14  }
  0x93   : > { %1013 = vperm.xlu1 %1916, %v903_v15   ;;  %1008 = vperm.xlu0 %1915, %v902_v16  }
  0x97   : > { %933 = vperm.xlu1 %1916, %v887_v17   ;;  %928 = vperm.xlu0 %1915, %v886_v18  }
  0x9b   : > { %1003 = vperm.xlu1 %1916, %v901_v19   ;;  %998 = vperm.xlu0 %1915, %v900_v20  }
  0x9e   : > { %v2392_v23 = vpop.permute.xlu0 %493  ;;  %v2394_v24 = vpop.permute.xlu1 %413 }
  0x9f   : > { %923 = vperm.xlu1 %1916, %v885_v21   ;;  %918 = vperm.xlu0 %1915, %v884_v22  }
  0xa2   : > { %v2399_v26 = vpop.permute.xlu0 %498  ;;  %v2401_v27 = vpop.permute.xlu1 %418 }
  0xa3   : > { %1449 = vperm.xlu0 %1915, %v1446_v25  }
  0xa6   : > { %v2403_v28 = vpop.permute.xlu0 %483  ;;  %v2405_v29 = vpop.permute.xlu1 %488 }
  0xaa   : > { %v2407_v30 = vpop.permute.xlu0 %403  ;;  %v2409_v31 = vpop.permute.xlu1 %408 }
  0xae   : > { %v2411_v32 = vpop.permute.xlu0 %473  ;;  %v2413_v33 = vpop.permute.xlu1 %478 }
  0xb2   : > { %v2415_v34 = vpop.permute.xlu0 %393  ;;  %v2417_v35 = vpop.permute.xlu1 %398 }
  0xb6   : > { %v2419_v36 = vpop.permute.xlu0 %463  ;;  %v2421_v37 = vpop.permute.xlu1 %468 }
  0xba   : > { %v2423_v38 = vpop.permute.xlu0 %383  ;;  %v2425_v39 = vpop.permute.xlu1 %388 }
  0xbe   : > { %v2427_v40 = vpop.permute.xlu0 %453  ;;  %v2429_v41 = vpop.permute.xlu1 %458 }
  0xc2   : > { %v374_v42 = vpop.permute.xlu0 %373  ;;  %v379_v45 = vpop.permute.xlu1 %378 }
  0xc6   : > { %v2437_v46 = vpop.permute.xlu0 %443  ;;  %v2439_v47 = vpop.permute.xlu1 %448 }
  0xca   : > { %v364_v48 = vpop.permute.xlu0 %363  ;;  %v369_v49 = vpop.permute.xlu1 %368 }
  0xce   : > { %v2441_v50 = vpop.permute.xlu0 %433  ;;  %v2443_v51 = vpop.permute.xlu1 %438 }
  0xd2   : > { %v354_v52 = vpop.permute.xlu0 %353  ;;  %v359_v53 = vpop.permute.xlu1 %358 }
  0xd6   : > { %v2445_v54 = vpop.permute.xlu0 %423  ;;  %v2447_v56 = vpop.permute.xlu1 %428 }
  0xda   : > { %v344_v59 = vpop.permute.xlu0 %343  ;;  %v349_v63 = vpop.permute.xlu1 %348 }
  0xf0   : > { %v1825_v55 = vpop.f32.mrf.mxu0 }
  0xf1   : > { %v686_v58 = vadd.f32 %v1825_v55, %v354_v52 }
  0xf2   : > { %v677_v57 = vpop.f32.mrf.mxu0 }
  0xf3   : > { %v678_v61 = vadd.f32 %v677_v57, %v344_v59  ;;  %v806_v1 = vmax.f32 %v686_v58, 0.0 }
  0xf4   : > { %v1826_v60 = vpop.f32.mrf.mxu0 }
  0xf5   : > { %v689_v62 = vadd.f32 %v1826_v60, %v359_v53  ;;  %v804_v5 = vmax.f32 %v678_v61, 0.0 }
  0xf6   : > { %v680_v0 = vpop.f32.mrf.mxu0 }
  0xf7   : > { %v807_v2 = vmax.f32 %v689_v62, 0.0  ;;  %v681_v3 = vadd.f32 %v680_v0, %v349_v63 }
  0xf8   : > { %v1829_v4 = vpop.f32.mrf.mxu0 }
  0xf9   : > { %v2449_v6 = vpack.c.bf16 %v807_v2, %v806_v1  ;;  %v805_v7 = vmax.f32 %v681_v3, 0.0  ;;  %v702_v10 = vadd.f32 %v1829_v4, %v374_v42 }
  0xfa   : > { %v693_v8 = vpop.f32.mrf.mxu0 }
  0xfb   : > { %v2451_v9 = vpack.c.bf16 %v805_v7, %v804_v5  ;;  %v694_v12 = vadd.f32 %v693_v8, %v364_v48  ;;  %v810_v15 = vmax.f32 %v702_v10, 0.0 }
  0xfc   : > { %v1830_v11 = vpop.f32.mrf.mxu0 }
  0xfd   : > { %v705_v13 = vadd.f32 %v1830_v11, %v379_v45  ;;  %v808_v19 = vmax.f32 %v694_v12, 0.0 }
  0xfe   : > { %v696_v14 = vpop.f32.mrf.mxu0 }
  0xff   : > { %v811_v16 = vmax.f32 %v705_v13, 0.0  ;;  %v697_v17 = vadd.f32 %v696_v14, %v369_v49 }
 0x100   : > { %v1833_v18 = vpop.f32.mrf.mxu0 }
 0x101   : > { %v2453_v20 = vpack.c.bf16 %v811_v16, %v810_v15  ;;  %v809_v21 = vmax.f32 %v697_v17, 0.0 }
 0x102   : > { %v2455_v22 = vpop.f32.mrf.mxu0 }
 0x103   : > { %v2457_v25 = vpack.c.bf16 %v809_v21, %v808_v19 }
 0x104   : > { %v1834_v43 = vpop.f32.mrf.mxu0 }
 0x106   : > { %v712_v44 = vpop.f32.mrf.mxu0 }
 0x108   : > { %v1837_v52 = vpop.f32.mrf.mxu0 }
 0x109   : > { %v734_v7 = vadd.f32 %v1837_v52, %v2394_v24 }
 0x10a   : > { %v725_v42 = vpop.f32.mrf.mxu0 }
 0x10b   : > { %v818_v19 = vmax.f32 %v734_v7, 0.0 }
 0x10c   : > { %v1838_v53 = vpop.f32.mrf.mxu0 }
 0x10d   : > { %v737_v3 = vadd.f32 %v1838_v53, %v2401_v27 }
 0x10e   : > { %v728_v48 = vpop.f32.mrf.mxu0 }
 0x10f   : > { %v819_v12 = vmax.f32 %v737_v3, 0.0  ;;  %v729_v13 = vadd.f32 %v728_v48, %v2409_v31 }
 0x110   : > { %v2459_v45 = vpop.f32.mrf.mxu0 }
 0x111   : > { %v875_v53 = vpack.c.bf16 %v819_v12, %v818_v19  ;;  %v1951_v12 = vld [vmem:[%s2785_s2 + $0x20] ss:$8 sps:$4 sm:$0xff]   ;;  %v1961_v19 = vld [vmem:[%s2785_s2 + $0x94] ss:$8 sps:$4 sm:$0xff]  }
 0x112   : > { %v2461_v55 = vpop.f32.mrf.mxu0 }
 0x114   : > { %v2463_v49 = vpop.f32.mrf.mxu0 }
 0x116   : > { %v2465_v57 = vpop.f32.mrf.mxu0 }
 0x118   : > { %v1845_v58 = vpop.f32.mrf.mxu0 }
 0x11a   : > { %v2467_v59 = vpop.f32.mrf.mxu0 }
 0x11c   : > { %v1846_v60 = vpop.f32.mrf.mxu0 }
 0x11e   : > { %v760_v61 = vpop.f32.mrf.mxu0 }
 0x120   : > { %v1849_v62 = vpop.f32.mrf.mxu0 }
 0x121   : > { %v782_v24 = vadd.f32 %v1849_v62, %v2411_v32  ;;  %v769_v62 = vadd.f32 %v1846_v60, %v2429_v41 }
 0x122   : > { %v773_v63 = vpop.f32.mrf.mxu0 }
 0x123   : > { %v774_v32 = vadd.f32 %v773_v63, %v2419_v36 }
 0x124   : > { %v1850_v0 = vpop.f32.mrf.mxu0 }
 0x125   : > { %v785_v15 = vadd.f32 %v1850_v0, %v2413_v33 }
 0x126   : > { %v776_v1 = vpop.f32.mrf.mxu0 }
 0x127   : > { %v831_v31 = vmax.f32 %v785_v15, 0.0  ;;  %v777_v48 = vadd.f32 %v776_v1, %v2421_v37  ;;  %v1955_v15 = vld [vmem:[%s2785_s2 + $0x84] ss:$8 sps:$4 sm:$0xff]  }
 0x128   : > { %v1853_v2 = vpop.f32.mrf.mxu0 }
 0x129   : > { %v798_v5 = vadd.f32 %v1853_v2, %v2392_v23  ;;  %v726_v23 = vadd.f32 %v725_v42, %v2407_v30  ;;  %v817_v2 = vmax.f32 %v729_v13, 0.0  ;;  %v830_v30 = vmax.f32 %v782_v24, 0.0  ;;  %v1952_v13 = vld [vmem:[%s2785_s2 + $0x70] ss:$8 sps:$4 sm:$0xff]  }
 0x12a   : > { %v789_v4 = vpop.f32.mrf.mxu0  ;;  %v829_v1 = vmax.f32 %v777_v48, 0.0  ;;  %v1964_v24 = vld [vmem:[%s2785_s2 + $0x90] ss:$8 sps:$4 sm:$0xff]  }
 0x12b   : > { %v790_v10 = vadd.f32 %v789_v4, %v2403_v28  ;;  %v834_v16 = vmax.f32 %v798_v5, 0.0  ;;  %v816_v0 = vmax.f32 %v726_v23, 0.0  ;;  %v881_v37 = vpack.c.bf16 %v831_v31, %v830_v30  ;;  %v1963_v23 = vld [vmem:[%s2785_s2 + $0x40] ss:$8 sps:$4 sm:$0xff]   ;;  %v1974_v31 = vld [vmem:[%s2785_s2 + $0xd4] ss:$8 sps:$4 sm:$0xff]  }
 0x12c   : > { %v1854_v8 = vpop.f32.mrf.mxu0  ;;  %v828_v4 = vmax.f32 %v774_v32, 0.0  ;;  %v827_v5 = vmax.f32 %v769_v62, 0.0  ;;  %v1976_v48 = vld [vmem:[%s2785_s2 + $0xd0] ss:$8 sps:$4 sm:$0xff]   ;;  %v2597_v32 = vpop.permute.xlu0 %1068 }
 0x12d   : > { %v801_v11 = vadd.f32 %v1854_v8, %v2399_v26  ;;  %v832_v21 = vmax.f32 %v790_v10, 0.0  ;;  %v721_v26 = vadd.f32 %v1834_v43, %v2417_v35  ;;  %v713_v35 = vadd.f32 %v712_v44, %v2425_v39  ;;  %v1982_v30 = vld [vmem:[%s2785_s2 + $0xf0] ss:$8 sps:$4 sm:$0xff]  }
 0x12e   : > { %v792_v14 = vpop.f32.mrf.mxu0  ;;  %v874_v43 = vpack.c.bf16 %v817_v2, %v816_v0  ;;  %v761_v39 = vadd.f32 %v760_v61, %v2439_v47  ;;  %v880_v44 = vpack.c.bf16 %v829_v1, %v828_v4  ;;  %v750_v47 = vadd.f32 %v2459_v45, %v2441_v50  ;;  %v1973_v2 = vld [vmem:[%s2785_s2 + $0xc0] ss:$8 sps:$4 sm:$0xff]   ;;  %v1980_v0 = vld [vmem:[%s2785_s2 + $0xf4] ss:$8 sps:$4 sm:$0xff]  }
 0x12f   : > { %v835_v17 = vmax.f32 %v801_v11, 0.0  ;;  %v793_v27 = vadd.f32 %v792_v14, %v2405_v29  ;;  %v718_v29 = vadd.f32 %v1833_v18, %v2415_v34  ;;  %v815_v42 = vmax.f32 %v721_v26, 0.0  ;;  %v1949_v11 = vld [vmem:[%s2785_s2 + $0x74] ss:$8 sps:$4 sm:$0xff]   ;;  %v1970_v26 = vld [vmem:[%s2785_s2 + $0xb0] ss:$8 sps:$4 sm:$0xff]  }
 0x130   : > { %v710_v34 = vadd.f32 %v2455_v22, %v2423_v38  ;;  %v766_v18 = vadd.f32 %v1845_v58, %v2427_v40  ;;  %v813_v63 = vmax.f32 %v713_v35, 0.0  ;;  %v758_v38 = vadd.f32 %v2467_v59, %v2437_v46  ;;  %v1953_v14 = vld [vmem:[%s2785_s2 + $0x34] ss:$8 sps:$4 sm:$0xff]   ;;  %v2601_v35 = vpop.permute.xlu0 %988 }
 0x131   : > { %v883_v52 = vpack.c.bf16 %v835_v17, %v834_v16  ;;  %v833_v28 = vmax.f32 %v793_v27, 0.0  ;;  %v814_v3 = vmax.f32 %v718_v29, 0.0  ;;  %v753_v40 = vadd.f32 %v2463_v49, %v2443_v51  ;;  %v1957_v16 = vld [vmem:[%s2785_s2 + $0x30] ss:$8 sps:$4 sm:$0xff]   ;;  %v1958_v17 = vld [vmem:[%s2785_s2 + $0x80] ss:$8 sps:$4 sm:$0xff]  }
 0x132   : > { %v812_v41 = vmax.f32 %v710_v34, 0.0  ;;  %v826_v60 = vmax.f32 %v766_v18, 0.0  ;;  %v825_v7 = vmax.f32 %v761_v39, 0.0  ;;  %v824_v61 = vmax.f32 %v758_v38, 0.0  ;;  %v1959_v27 = vld [vmem:[%s2785_s2 + $0x44] ss:$8 sps:$4 sm:$0xff]  }
 0x133   : > { %v882_v33 = vpack.c.bf16 %v833_v28, %v832_v21  ;;  %1685 = vmatprep.subr.bf16.mxu0 %v883_v52  ;;  %1855 = vmatprep.subr.bf16.mxu1 %v883_v52  ;;  %v873_v36 = vpack.c.bf16 %v815_v42, %v814_v3  ;;  %v823_v8 = vmax.f32 %v753_v40, 0.0  ;;  %v745_v46 = vadd.f32 %v2465_v57, %v2447_v56  ;;  %v1947_v57 = vld [vmem:[%s2785_s2 + $0x24] ss:$8 sps:$4 sm:$0xff]   ;;  %v1967_v52 = vld [vmem:[%s2785_s2 + $0xa0] ss:$8 sps:$4 sm:$0xff]   ;;  %v2599_v42 = vpop.permute.xlu1 %1073 }
 0x134   : > { %1686 = vmatpush3.bf16.msra.mxu0 %v875_v53  ;;  %1863 = vmatpush3.bf16.msra.mxu1 %v875_v53  ;;  %v872_v22 = vpack.c.bf16 %v813_v63, %v812_v41  ;;  %v879_v58 = vpack.c.bf16 %v827_v5, %v826_v60  ;;  %v878_v59 = vpack.c.bf16 %v825_v7, %v824_v61  ;;  %v822_v51 = vmax.f32 %v750_v47, 0.0  ;;  %v1965_v21 = vld [vmem:[%s2785_s2 + $0xa4] ss:$8 sps:$4 sm:$0xff]   ;;  %v1968_v28 = vld [vmem:[%s2785_s2 + $0xb4] ss:$8 sps:$4 sm:$0xff]   ;;  %v2605_v62 = vpop.permute.xlu0 %1058 }
 0x135   : > { %1687 = vmatprep.subr.bf16.mxu0 %v882_v33  ;;  %1856 = vmatprep.subr.bf16.mxu1 %v882_v33  ;;  %v742_v49 = vadd.f32 %v2461_v55, %v2445_v54  ;;  %v821_v50 = vmax.f32 %v745_v46, 0.0  ;;  %v1935_v54 = vld [vmem:[%s2785_s2] ss:$8 sps:$4 sm:$0xff]   ;;  %v1945_v55 = vld [vmem:[%s2785_s2 + $0x10] ss:$8 sps:$4 sm:$0xff]   ;;  %v1464_v38 = vlaneseq }
 0x136   : > { %v877_v10 = vpack.c.bf16 %v823_v8, %v822_v51  ;;  %v1971_v53 = vld [vmem:[%s2785_s2 + $0xc4] ss:$8 sps:$4 sm:$0xff]   ;;  %v1979_v29 = vld [vmem:[%s2785_s2 + $0xe0] ss:$8 sps:$4 sm:$0xff]   ;;  %v2046_v41 = vmov 1966171168  }
 0x137   : > { %v820_v45 = vmax.f32 %v742_v49, 0.0  ;;  %v1977_v33 = vld [vmem:[%s2785_s2 + $0xe4] ss:$8 sps:$4 sm:$0xff]   ;;  %v1462_v60 = vunpack.c.l.s4 %v2046_v41  ;;  %v1465_v40 = vshrl.u32 %v1464_v38, 7 }
 0x138   : > { %1688 = vmatpush3.bf16.msra.mxu0 %v874_v43  ;;  %1864 = vmatpush3.bf16.msra.mxu1 %v874_v43  ;;  %v2603_v43 = vpop.permute.xlu1 %993  ;;  %v979_v1 = vpop.permute.xlu0 %978 }
 0x139   : > { %1689 = vmatprep.subr.bf16.mxu0 %v881_v37  ;;  %1857 = vmatprep.subr.bf16.mxu1 %v881_v37  ;;  %v876_v56 = vpack.c.bf16 %v821_v50, %v820_v45 }
 0x13c   : > { %1690 = vmatpush3.bf16.msra.mxu0 %v873_v36  ;;  %1865 = vmatpush3.bf16.msra.mxu1 %v873_v36  ;;  %v2607_v37 = vpop.permute.xlu1 %1063  ;;  %v2609_v34 = vpop.permute.xlu0 %1048 }
 0x13d   : > { %1691 = vmatprep.subr.bf16.mxu0 %v880_v44  ;;  %1858 = vmatprep.subr.bf16.mxu1 %v880_v44 }
 0x140   : > { %1692 = vmatpush3.bf16.msra.mxu0 %v872_v22  ;;  %1866 = vmatpush3.bf16.msra.mxu1 %v872_v22  ;;  %v984_v3 = vpop.permute.xlu1 %983  ;;  %v969_v4 = vpop.permute.xlu0 %968  ;;  %v1463_v22 = vunpack.c.0.s8 %v1462_v60 }
 0x141   : > { %1693 = vmatprep.subr.bf16.mxu0 %v879_v58  ;;  %1859 = vmatprep.subr.bf16.mxu1 %v879_v58  ;;  %v2624_v58 = vld.sshfl [vmem:[%s2786_s3] sm:$0x11 pattern:$0x75316420] }
 0x142   : > { %2793 = vst [vmem:[#allocation6_spill] sm:$0xff] %v2624_v58  ;;  %v1460_v47 = vcombine.high %v2624_v58, %v2624_v58  ;;  %v2630_v61 = vsub.s32 %v1463_v22, %v1465_v40 }
 0x144   : > { %1694 = vmatpush3.bf16.msra.mxu0 %v2453_v20  ;;  %1867 = vmatpush3.bf16.msra.mxu1 %v2453_v20  ;;  %v1938_v20 = vld [vmem:[%s2785_s2 + $0x50] ss:$8 sps:$4 sm:$0xff]   ;;  %v2611_v18 = vpop.permute.xlu1 %1053  ;;  %v2613_v63 = vpop.permute.xlu0 %1038  ;;  %2794 = vst [vmem:[#allocation7_spill] sm:$0xff] %v2630_v61 }
 0x145   : > { %1695 = vmatprep.subr.bf16.mxu0 %v878_v59  ;;  %1860 = vmatprep.subr.bf16.mxu1 %v878_v59  ;;  %v1474_v59 = vrot.slane %v1460_v47, %v2630_v61 }
 0x148   : > { %1696 = vmatpush3.bf16.msra.mxu0 %v2457_v25  ;;  %1868 = vmatpush3.bf16.msra.mxu1 %v2457_v25  ;;  %v1941_v25 = vld [vmem:[%s2785_s2 + $0x14] ss:$8 sps:$4 sm:$0xff]   ;;  %v974_v36 = vpop.permute.xlu1 %973  ;;  %v2617_v39 = vpop.permute.xlu0 %958 }
 0x149   : > { %1697 = vmatprep.subr.bf16.mxu0 %v877_v10  ;;  %1861 = vmatprep.subr.bf16.mxu1 %v877_v10 }
 0x14c   : > { %1698 = vmatpush3.bf16.msra.mxu0 %v2449_v6  ;;  %1869 = vmatpush3.bf16.msra.mxu1 %v2449_v6  ;;  %v1943_v6 = vld [vmem:[%s2785_s2 + $0x64] ss:$8 sps:$4 sm:$0xff]   ;;  %v2615_v5 = vpop.permute.xlu1 %1043  ;;  %v2626_v7 = vpop.permute.xlu0 %1028 }
 0x14d   : > { %1699 = vmatprep.subr.bf16.mxu0 %v876_v56  ;;  %1862 = vmatprep.subr.bf16.mxu1 %v876_v56 }
 0x150   : > { %1700 = vmatpush3.bf16.msra.mxu0 %v2451_v9  ;;  %1870 = vmatpush3.bf16.msra.mxu1 %v2451_v9  ;;  %v1946_v9 = vld [vmem:[%s2785_s2 + $0x60] ss:$8 sps:$4 sm:$0xff]   ;;  %v2619_v44 = vpop.permute.xlu1 %963  ;;  %v2637_v51 = vpop.permute.xlu0 %948 }
 0x153   : > { %1269 = vmatmul.mubr.bf16.vlgmr.msra.gmra.mxu0 %v1935_v54  ;;  %1309 = vmatmul.mubr.bf16.vlgmr.msra.gmra.mxu1 %v1938_v20 }
 0x154   : > { %1276 = vmatprep.mubr.bf16.mxu0 %v1941_v25  ;;  %1316 = vmatprep.mubr.bf16.mxu1 %v1943_v6  ;;  %v2632_v8 = vpop.permute.xlu1 %1033  ;;  %v2641_v54 = vpop.permute.xlu0 %1018 }
 0x155   : > { %2795 = vst [vmem:[#allocation8_spill] sm:$0xff] %v2641_v54 }
 0x158   : > { %v2639_v10 = vpop.permute.xlu1 %953 }
 0x15b   : > { %1277 = vmatmul.mubr.bf16.gmra.mxu0 %v1945_v55  ;;  %1317 = vmatmul.mubr.bf16.gmra.mxu1 %v1946_v9 }
 0x15c   : > { %1284 = vmatprep.mubr.bf16.mxu0 %v1947_v57  ;;  %1324 = vmatprep.mubr.bf16.mxu1 %v1949_v11  ;;  %v2643_v55 = vpop.permute.xlu1 %1023 }
 0x163   : > { %1285 = vmatmul.mubr.bf16.gmra.mxu0 %v1951_v12  ;;  %1325 = vmatmul.mubr.bf16.gmra.mxu1 %v1952_v13 }
 0x164   : > { %1292 = vmatprep.mubr.bf16.mxu0 %v1953_v14  ;;  %1332 = vmatprep.mubr.bf16.mxu1 %v1955_v15  ;;  %v2645_v15 = vpop.permute.xlu0 %938 }
 0x165   : > { %2796 = vst [vmem:[#allocation9_spill] sm:$0xff] %v2645_v15 }
 0x16b   : > { %1293 = vmatmul.mubr.bf16.gmra.mxu0 %v1957_v16  ;;  %1333 = vmatmul.mubr.bf16.gmra.mxu1 %v1958_v17 }
 0x16c   : > { %1300 = vmatprep.mubr.bf16.mxu0 %v1959_v27  ;;  %1340 = vmatprep.mubr.bf16.mxu1 %v1961_v19  ;;  %v2649_v27 = vpop.permute.xlu1 %943 }
 0x16d   : > { %2798 = vst [vmem:[#allocation11_spill] sm:$0xff] %v2649_v27 }
 0x173   : > { %1301 = vmatmul.mubr.bf16.gmra.mxu0 %v1963_v23  ;;  %1341 = vmatmul.mubr.bf16.gmra.mxu1 %v1964_v24 }
 0x174   : > { %1348 = vmatprep.mubr.bf16.mxu1 %v1965_v21  ;;  %1509 = vmatprep.mubr.bf16.mxu0 %v1474_v59 }
 0x17b   : > { %1349 = vmatmul.mubr.bf16.gmra.mxu1 %v1967_v52 }
 0x17c   : > { %1356 = vmatprep.mubr.bf16.mxu1 %v1968_v28 }
 0x183   : > { %1357 = vmatmul.mubr.bf16.gmra.mxu1 %v1970_v26  ;;  %v1009_v26 = vpop.permute.xlu0 %1008 }
 0x184   : > { %1364 = vmatprep.mubr.bf16.mxu1 %v1971_v53 }
 0x187   : > { %v2660_v60 = vpop.permute.xlu0 %928 }
 0x188   : > { %2802 = vst [vmem:[#allocation15_spill] sm:$0xff] %v2660_v60 }
 0x18b   : > { %1365 = vmatmul.mubr.bf16.gmra.mxu1 %v1973_v2 }
 0x18c   : > { %1372 = vmatprep.mubr.bf16.mxu1 %v1974_v31 }
 0x193   : > { %1373 = vmatmul.mubr.bf16.gmra.mxu1 %v1976_v48 }
 0x194   : > { %1380 = vmatprep.mubr.bf16.mxu1 %v1977_v33 }
 0x19b   : > { %1381 = vmatmul.mubr.bf16.gmra.mxu1 %v1979_v29  ;;  %v1014_v29 = vpop.permute.xlu1 %1013 }
 0x19c   : > { %1388 = vmatprep.mubr.bf16.mxu1 %v1980_v0 }
 0x19f   : > { %v2663_v22 = vpop.permute.xlu1 %933 }
 0x1a0   : > { %2803 = vst [vmem:[#allocation16_spill] sm:$0xff] %v2663_v22 }
 0x1a3   : > { %1389 = vmatmul.mubr.bf16.gmra.mxu1 %v1982_v30 }
 0x213   : > { %v1731_v49 = vpop.f32.mrf.mxu1  ;;  %v2651_v23 = vpop.f32.mrf.mxu0 }
 0x214   : > { %2799 = vst [vmem:[#allocation12_spill] sm:$0xff] %v2651_v23 }
 0x215   : > { %v1732_v50 = vpop.f32.mrf.mxu1  ;;  %v2653_v2 = vpop.f32.mrf.mxu0 }
 0x216   : > { %v1733_v45 = vadd.f32 %v1732_v50, %v1731_v49  ;;  %2800 = vst [vmem:[#allocation13_spill] sm:$0xff] %v2653_v2 }
 0x217   : > { %v1734_v56 = vpop.f32.mrf.mxu1 }
 0x218   : > { %v1311_v25 = vadd.f32 %v1733_v45, %v969_v4 }
 0x219   : > { %v1735_v20 = vpop.f32.mrf.mxu1 }
 0x21a   : > { %v1736_v6 = vadd.f32 %v1735_v20, %v1734_v56  ;;  %v1407_v12 = vmax.f32 %v1311_v25, 0.0  ;;  %v999_v20 = vpop.permute.xlu0 %998 }
 0x21b   : > { %v1737_v9 = vpop.f32.mrf.mxu1 }
 0x21c   : > { %v1314_v57 = vadd.f32 %v1736_v6, %v974_v36  ;;  %v2657_v36 = vpop.f32.mrf.mxu0 }
 0x21d   : > { %v1738_v11 = vpop.f32.mrf.mxu1  ;;  %2801 = vst [vmem:[#allocation14_spill] sm:$0xff] %v2657_v36 }
 0x21e   : > { %v1408_v13 = vmax.f32 %v1314_v57, 0.0  ;;  %v1739_v14 = vadd.f32 %v1738_v11, %v1737_v9  ;;  %v2665_v47 = vpop.f32.mrf.mxu0  ;;  %v1004_v57 = vpop.permute.xlu1 %1003 }
 0x21f   : > { %v1740_v16 = vpop.f32.mrf.mxu1  ;;  %2804 = vst [vmem:[#allocation17_spill] sm:$0xff] %v2665_v47 }
 0x220   : > { %v2647_v17 = vpack.c.bf16 %v1408_v13, %v1407_v12  ;;  %v1319_v24 = vadd.f32 %v1739_v14, %v979_v1 }
 0x221   : > { %v1741_v19 = vpop.f32.mrf.mxu1 }
 0x222   : > { %2797 = vst [vmem:[#allocation10_spill] sm:$0xff] %v2647_v17  ;;  %v1742_v21 = vadd.f32 %v1741_v19, %v1740_v16  ;;  %v1409_v31 = vmax.f32 %v1319_v24, 0.0 }
 0x223   : > { %v1743_v52 = vpop.f32.mrf.mxu1 }
 0x224   : > { %v1322_v28 = vadd.f32 %v1742_v21, %v984_v3 }
 0x225   : > { %v1744_v53 = vpop.f32.mrf.mxu1 }
 0x226   : > { %v1410_v48 = vmax.f32 %v1322_v28, 0.0  ;;  %v1745_v33 = vadd.f32 %v1744_v53, %v1743_v52 }
 0x227   : > { %v1746_v0 = vpop.f32.mrf.mxu1 }
 0x228   : > { %v2655_v30 = vpack.c.bf16 %v1410_v48, %v1409_v31  ;;  %v1327_v41 = vadd.f32 %v1745_v33, %v2601_v35  ;;  %v2669_v35 = vpop.f32.mrf.mxu0 }
 0x229   : > { %v1747_v4 = vpop.f32.mrf.mxu1  ;;  %2805 = vst [vmem:[#allocation18_spill] sm:$0xff] %v2669_v35 }
 0x22a   : > { %v1748_v1 = vadd.f32 %v1747_v4, %v1746_v0  ;;  %v1411_v59 = vmax.f32 %v1327_v41, 0.0  ;;  %v2671_v13 = vpop.f32.mrf.mxu0 }
 0x22b   : > { %v1749_v3 = vpop.f32.mrf.mxu1  ;;  %2806 = vst [vmem:[#allocation19_spill] sm:$0xff] %v2671_v13 }
 0x22c   : > { %v1330_v38 = vadd.f32 %v1748_v1, %v2603_v43  ;;  %v2675_v28 = vpop.f32.mrf.mxu0 }
 0x22d   : > { %v1750_v40 = vpop.f32.mrf.mxu1  ;;  %2808 = vst [vmem:[#allocation21_spill] sm:$0xff] %v2675_v28 }
 0x22e   : > { %v1412_v49 = vmax.f32 %v1330_v38, 0.0  ;;  %v1751_v50 = vadd.f32 %v1750_v40, %v1749_v3  ;;  %v2681_v4 = vpop.f32.mrf.mxu0 }
 0x22f   : > { %v1752_v45 = vpop.f32.mrf.mxu1  ;;  %2809 = vst [vmem:[#allocation22_spill] sm:$0xff] %v2681_v4 }
 0x230   : > { %v2667_v56 = vpack.c.bf16 %v1412_v49, %v1411_v59  ;;  %v1335_v6 = vadd.f32 %v1751_v50, %v999_v20  ;;  %v2689_v59 = vpop.f32.mrf.mxu0 }
 0x231   : > { %v1753_v25 = vpop.f32.mrf.mxu1 }
 0x232   : > { %v1754_v9 = vadd.f32 %v1753_v25, %v1752_v45  ;;  %v1413_v14 = vmax.f32 %v1335_v6, 0.0  ;;  %v2691_v50 = vpop.f32.mrf.mxu0 }
 0x233   : > { %v1755_v11 = vpop.f32.mrf.mxu1 }
 0x234   : > { %v1338_v43 = vadd.f32 %v1754_v9, %v1004_v57  ;;  %v2693_v20 = vpop.f32.mrf.mxu0 }
 0x235   : > { %v1756_v12 = vpop.f32.mrf.mxu1 }
 0x236   : > { %v1414_v16 = vmax.f32 %v1338_v43, 0.0  ;;  %v1757_v19 = vadd.f32 %v1756_v12, %v1755_v11  ;;  %v2695_v9 = vpop.f32.mrf.mxu0 }
 0x237   : > { %v1758_v24 = vpop.f32.mrf.mxu1 }
 0x238   : > { %v2673_v21 = vpack.c.bf16 %v1414_v16, %v1413_v14  ;;  %v1343_v53 = vadd.f32 %v1757_v19, %v1009_v26  ;;  %v1719_v43 = vpop.f32.mrf.mxu0 }
 0x239   : > { %v1759_v52 = vpop.f32.mrf.mxu1 }
 0x23a   : > { %2807 = vst [vmem:[#allocation20_spill] sm:$0xff] %v2673_v21  ;;  %v1760_v31 = vadd.f32 %v1759_v52, %v1758_v24  ;;  %v1415_v41 = vmax.f32 %v1343_v53, 0.0  ;;  %v1720_v16 = vpop.f32.mrf.mxu0 }
 0x23b   : > { %v2677_v48 = vpop.f32.mrf.mxu1 }
 0x23c   : > { %v1346_v33 = vadd.f32 %v1760_v31, %v1014_v29  ;;  %v1722_v52 = vpop.f32.mrf.mxu0 }
 0x23d   : > { %v2679_v0 = vpop.f32.mrf.mxu1 }
 0x23e   : > { %v1416_v1 = vmax.f32 %v1346_v33, 0.0  ;;  %v1723_v33 = vpop.f32.mrf.mxu0 }
 0x23f   : > { %v2683_v3 = vpop.f32.mrf.mxu1 }
 0x240   : > { %v2685_v38 = vpack.c.bf16 %v1416_v1, %v1415_v41  ;;  %v1725_v46 = vpop.f32.mrf.mxu0 }
 0x241   : > { %v2687_v40 = vpop.f32.mrf.mxu1 }
 0x242   : > { %2810 = vst [vmem:[#allocation23_spill] sm:$0xff] %v2685_v38  ;;  %v1726_v21 = vpop.f32.mrf.mxu0 }
 0x243   : > { %v1767_v49 = vpop.f32.mrf.mxu1 }
 0x244   : > { %v1728_v47 = vpop.f32.mrf.mxu0 }
 0x245   : > { %v1768_v26 = vpop.f32.mrf.mxu1 }
 0x246   : > { %v1729_v17 = vpop.f32.mrf.mxu0 }
 0x247   : > { %v1770_v45 = vpop.f32.mrf.mxu1 }
 0x249   : > { %v1771_v29 = vpop.f32.mrf.mxu1 }
 0x24b   : > { %v1773_v25 = vpop.f32.mrf.mxu1 }
 0x24d   : > { %v1774_v6 = vpop.f32.mrf.mxu1 }
 0x24f   : > { %v1776_v57 = vpop.f32.mrf.mxu1 }
 0x251   : > { %v1777_v11 = vpop.f32.mrf.mxu1 }
 0x252   : > { %v1778_v54 = vadd.f32 %v1777_v11, %v1776_v57 }
 0x253   : > { %v1779_v12 = vpop.f32.mrf.mxu1 }
 0x255   : > { %v1780_v14 = vpop.f32.mrf.mxu1 }
 0x256   : > { %v1781_v27 = vadd.f32 %v1780_v14, %v1779_v12  ;;  %v2820_v12 = vld [vmem:[#allocation17_spill] sm:$0xff] }
 0x257   : > { %v1782_v19 = vpop.f32.mrf.mxu1 }
 0x259   : > { %v1783_v24 = vpop.f32.mrf.mxu1 }
 0x25a   : > { %v1784_v36 = vadd.f32 %v1783_v24, %v1782_v19  ;;  %v1375_v19 = vadd.f32 %v1781_v27, %v2609_v34 }
 0x25b   : > { %v1785_v53 = vpop.f32.mrf.mxu1 }
 0x25d   : > { %v1786_v31 = vpop.f32.mrf.mxu1 }
 0x25e   : > { %v1787_v23 = vadd.f32 %v1786_v31, %v1785_v53  ;;  %v1775_v31 = vadd.f32 %v1774_v6, %v1773_v25  ;;  %v2816_v6 = vld [vmem:[#allocation18_spill] sm:$0xff] }
 0x25f   : > { %v1788_v41 = vpop.f32.mrf.mxu1 }
 0x260   : > { %v1383_v4 = vadd.f32 %v1787_v23, %v2605_v62  ;;  %v1769_v23 = vadd.f32 %v1768_v26, %v1767_v49  ;;  %v2814_v49 = vld [vmem:[#allocation22_spill] sm:$0xff]  ;;  %v2815_v26 = vld [vmem:[#allocation11_spill] sm:$0xff] }
 0x261   : > { %v1789_v1 = vpop.f32.mrf.mxu1 }
 0x262   : > { %v1790_v38 = vadd.f32 %v1789_v1, %v1788_v41  ;;  %v1378_v41 = vadd.f32 %v1784_v36, %v2611_v18  ;;  %v1425_v24 = vmax.f32 %v1383_v4, 0.0  ;;  %v1367_v18 = vadd.f32 %v1775_v31, %v2613_v63  ;;  %v2824_v31 = vld [vmem:[#allocation15_spill] sm:$0xff] }
 0x263   : > { %v1791_v61 = vpop.f32.mrf.mxu1  ;;  %v1724_v36 = vadd.f32 %v1723_v33, %v1722_v52  ;;  %v1763_v63 = vadd.f32 %v2679_v0, %v2677_v48  ;;  %v2811_v0 = vld [vmem:[#allocation10_spill] sm:$0xff] }
 0x264   : > { %v1386_v15 = vadd.f32 %v1790_v38, %v2607_v37  ;;  %v1730_v38 = vadd.f32 %v1729_v17, %v1728_v47  ;;  %v1766_v17 = vadd.f32 %v2687_v40, %v2683_v3  ;;  %v1359_v47 = vadd.f32 %v1769_v23, %v2626_v7  ;;  %v2812_v7 = vld [vmem:[#allocation8_spill] sm:$0xff]  ;;  %v2813_v40 = vld [vmem:[#allocation21_spill] sm:$0xff]  ;;  %v2825_v23 = vld [vmem:[#allocation23_spill] sm:$0xff] }
 0x265   : > { %v1792_v58 = vpop.f32.mrf.mxu1  ;;  %v1351_v4 = vadd.f32 %v1763_v63, %v2812_v7 }
 0x266   : > { %v1793_v60 = vadd.f32 %v1792_v58, %v1791_v61  ;;  %v1426_v58 = vmax.f32 %v1386_v15, 0.0  ;;  %v1423_v15 = vmax.f32 %v1375_v19, 0.0  ;;  %v1306_v34 = vadd.f32 %v1730_v38, %v2619_v44 }
 0x267   : > { %v1794_v2 = vpop.f32.mrf.mxu1  ;;  %v1718_v44 = vadd.f32 %v2695_v9, %v2693_v20  ;;  %v1419_v3 = vmax.f32 %v1359_v47, 0.0  ;;  %v1417_v11 = vmax.f32 %v1351_v4, 0.0 }
 0x268   : > { %v1391_v13 = vadd.f32 %v1793_v60, %v2597_v32  ;;  %v1772_v32 = vadd.f32 %v1771_v29, %v1770_v45  ;;  %v1424_v60 = vmax.f32 %v1378_v41, 0.0  ;;  %v1444_v62 = vpack.c.bf16 %v1426_v58, %v1425_v24  ;;  %v2822_v58 = vld [vmem:[#allocation12_spill] sm:$0xff] }
 0x269   : > { %v1795_v22 = vpop.f32.mrf.mxu1  ;;  %v1290_v45 = vadd.f32 %v1718_v44, %v2815_v26 }
 0x26a   : > { %v1796_v35 = vadd.f32 %v1795_v22, %v1794_v2  ;;  %v1427_v61 = vmax.f32 %v1391_v13, 0.0  ;;  %v1370_v2 = vadd.f32 %v1778_v54, %v2615_v5  ;;  %v1362_v27 = vadd.f32 %v1772_v32, %v2632_v8 }
 0x26b   : > { %v1443_v54 = vpack.c.bf16 %v1424_v60, %v1423_v15  ;;  %v1721_v22 = vadd.f32 %v1720_v16, %v1719_v43  ;;  %v1406_v8 = vmax.f32 %v1306_v34, 0.0  ;;  %v1354_v13 = vadd.f32 %v1766_v17, %v2643_v55  ;;  %v2819_v43 = vld [vmem:[#allocation14_spill] sm:$0xff]  ;;  %v2821_v16 = vld [vmem:[#allocation16_spill] sm:$0xff]  ;;  %v919_v60 = vpop.permute.xlu0 %918 }
 0x26c   : > { %v1394_v28 = vadd.f32 %v1796_v35, %v2599_v42  ;;  %v1727_v42 = vadd.f32 %v1726_v21, %v1725_v46  ;;  %v1422_v5 = vmax.f32 %v1370_v2, 0.0  ;;  %v1298_v35 = vadd.f32 %v1724_v36, %v2639_v10  ;;  %v2826_v34 = vld [vmem:[#allocation20_spill] sm:$0xff] }
 0x26d   : > { %v1420_v21 = vmax.f32 %v1362_v27, 0.0  ;;  %v1712_v10 = vadd.f32 %v2814_v49, %v2813_v40  ;;  %v1418_v20 = vmax.f32 %v1354_v13, 0.0  ;;  %v1706_v14 = vadd.f32 %v2820_v12, %v2819_v43  ;;  %v2827_v27 = vld [vmem:[#allocation6_spill] sm:$0xff] }
 0x26e   : > { %v1428_v53 = vmax.f32 %v1394_v28, 0.0  ;;  %v1303_v46 = vadd.f32 %v1727_v42, %v2617_v39  ;;  %v1715_v39 = vadd.f32 %v2691_v50, %v2689_v59  ;;  %v1404_v55 = vmax.f32 %v1298_v35, 0.0  ;;  %v2817_v59 = vld [vmem:[#allocation19_spill] sm:$0xff] }
 0x26f   : > { %v1441_v25 = vpack.c.bf16 %v1420_v21, %v1419_v3  ;;  %v1709_v50 = vadd.f32 %v2817_v59, %v2816_v6  ;;  %v1282_v52 = vadd.f32 %v1712_v10, %v2821_v16  ;;  %v1402_v33 = vmax.f32 %v1290_v45, 0.0  ;;  %v1450_v47 = vpop.permute.xlu0 %1449 }
 0x270   : > { %v1445_v37 = vpack.c.bf16 %v1428_v53, %v1427_v61  ;;  %v1405_v48 = vmax.f32 %v1303_v46, 0.0  ;;  %v1440_v41 = vpack.c.bf16 %v1418_v20, %v1417_v11  ;;  %v2823_v61 = vld [vmem:[#allocation13_spill] sm:$0xff] }
 0x271   : > { %v1703_v53 = vadd.f32 %v2823_v61, %v2822_v58  ;;  %v1279_v19 = vadd.f32 %v1709_v50, %v2824_v31  ;;  %v1400_v32 = vmax.f32 %v1282_v52, 0.0 }
 0x272   : > { %1797 = vmatprep.subr.bf16.mxu0 %v1445_v37  ;;  %v1434_v29 = vpack.c.bf16 %v1406_v8, %v1405_v48  ;;  %v924_v37 = vpop.permute.xlu1 %923 }
 0x273   : > { %1798 = vmatpush3.bf16.msra.mxu0 %v2667_v56  ;;  %v1421_v56 = vmax.f32 %v1367_v18, 0.0  ;;  %v1274_v38 = vadd.f32 %v1706_v14, %v924_v37  ;;  %v1399_v42 = vmax.f32 %v1279_v19, 0.0 }
 0x274   : > { %1799 = vmatprep.subr.bf16.mxu0 %v1444_v62  ;;  %v1271_v62 = vadd.f32 %v1703_v53, %v919_v60 }
 0x275   : > { %v1442_v28 = vpack.c.bf16 %v1422_v5, %v1421_v56  ;;  %v1398_v18 = vmax.f32 %v1274_v38, 0.0  ;;  %v1431_v15 = vpack.c.bf16 %v1400_v32, %v1399_v42  ;;  %v2828_v5 = vld [vmem:[#allocation7_spill] sm:$0xff] }
 0x276   : > { %v1397_v36 = vmax.f32 %v1271_v62, 0.0 }
 0x277   : > { %1800 = vmatpush3.bf16.msra.mxu0 %v2655_v30  ;;  %v1295_v30 = vadd.f32 %v1721_v22, %v2637_v51  ;;  %v2818_v51 = vld [vmem:[#allocation9_spill] sm:$0xff] }
 0x278   : > { %1801 = vmatprep.subr.bf16.mxu0 %v1443_v54  ;;  %v1287_v9 = vadd.f32 %v1715_v39, %v2818_v51  ;;  %v1430_v17 = vpack.c.bf16 %v1398_v18, %v1397_v36  ;;  %v2829_v54 = vrot.slane %v2827_v27, %v2828_v5 }
 0x279   : > { %v1403_v57 = vmax.f32 %v1295_v30, 0.0 }
 0x27a   : > { %v1401_v24 = vmax.f32 %v1287_v9, 0.0 }
 0x27b   : > { %1802 = vmatpush3.bf16.msra.mxu0 %v2811_v0  ;;  %v1433_v1 = vpack.c.bf16 %v1404_v55, %v1403_v57 }
 0x27c   : > { %1803 = vmatprep.subr.bf16.mxu0 %v1442_v28  ;;  %v1432_v2 = vpack.c.bf16 %v1402_v33, %v1401_v24 }
 0x27f   : > { %1804 = vmatpush3.bf16.msra.mxu0 %v1434_v29 }
 0x280   : > { %1805 = vmatprep.subr.bf16.mxu0 %v1441_v25 }
 0x283   : > { %1806 = vmatpush3.bf16.msra.mxu0 %v1433_v1 }
 0x284   : > { %1807 = vmatprep.subr.bf16.mxu0 %v1440_v41 }
 0x287   : > { %1808 = vmatpush3.bf16.msra.mxu0 %v1432_v2 }
 0x288   : > { %1809 = vmatprep.subr.bf16.mxu0 %v2825_v23 }
 0x28b   : > { %1810 = vmatpush3.bf16.msra.mxu0 %v1431_v15 }
 0x28c   : > { %1811 = vmatprep.subr.bf16.mxu0 %v2826_v34 }
 0x28f   : > { %1812 = vmatpush3.bf16.msra.mxu0 %v1430_v17 }
 0x292   : > { %1510 = vmatmul.mubr.bf16.vlgmr.msra.gmra.mxu0 %v2829_v54 }
 0x352   : > { %v1813_v22 = vpop.f32.mrf.mxu0 }
 0x354   : > { %v1814_v46 = vpop.f32.mrf.mxu0 }
 0x355   : > { %v1815_v63 = vadd.f32 %v1814_v46, %v1813_v22 }
 0x356   : > { %v1816_v56 = vpop.f32.mrf.mxu0 }
 0x357   : > { %v1512_v44 = vadd.f32 %v1815_v63, %v1450_v47 }
 0x358   : > { %v1817_v35 = vpop.f32.mrf.mxu0 }
 0x359   : > { %1517 = vst [vmem:[%s272_s25] sm:$0x1] %v1512_v44 }
 0x35a   : > { %1996 = shalt.err (!%p1993_p5)
}
 0x35b   : > { %s1997_s12 = scalar_lea.hbm %s2747_s7, 16  ;;  %s2001_s14 = scalar_lea.hbm %s2788_s5, 48 }
 0x35c   : > { %p1998_p7 = scmp.ne.s32.totalorder %s2747_s7, %s1997_s12  ;;  %p2002_p11 = scmp.lt.s32.totalorder %s2747_s7, %s2788_s5 }
 0x35d   : > { %p2003_p12 = scmp.lt.s32.totalorder %s2001_s14, %s1997_s12 }
 0x35e   : > { %p1999_p9 = pnand %p1998_p7, %p2116_p6 }
 0x35f   : > { %p2004_p13 = por %p2003_p12, %p2002_p11 }
 0x360   : > { %p2000_p10 = pneg %p1999_p9 }
 0x362   : > { %p2005_p0 = pnand %p2004_p13, %p2000_p10 }
 0x364   : > { %2008 = shalt.err (!%p2005_p0)
}
 0x365   : > { %1874 = dma.vmem_to_hbm [thread:$0]  (%p2116_p6), %s1532_s26, 16, %s2747_s7, %s1519_s8  }
 0x366 PF: > { %p1880_p1 = scmp.ge.s32.totalorder %s2043_s21, 2  ;;  %s1543_s23 = sand.u32 1, %s2031_s18  }
 0x367   : > { %s1544_s25 = scalar_lea.sflag [#allocation4], %s1543_s23 }
 0x368   : > { %p1877_p2 = pnand %p1880_p1, %p2120_p8 }
 0x36a   : > { %p1878_p3 = pneg %p1877_p2 }
 0x36c   : > { %2026 = dma.done.wait (%p1878_p3), %s1544_s25, 16  }
 0x36d   : > { %2028 = vsyncadd (%p1878_p3), %s1544_s25, 4294967280  ;;  %p15_p4 = scmp.ge.s32.totalorder %s2101_s24, 5   ;;  %s2830_s18 = smov %s2035_s19 }
 0x36e   : > { %s2831_s19 = smov %s2039_s20  ;;  %s2832_s20 = smov %s2114_s27 }
 0x36f   : > { %s2833_s21 = smov %s2101_s24  ;;  %17 = sbr.rel (!%p15_p4) target bundleno = 3 (0x3), region = 121 }
 0x374   :  { %1548 = vsyncpa [#allocation4], 1 }
 0x375   :  { %1550 = vsyncpa [#allocation4 + $0x1], 1 }

</bundles_post_ra>
